<compile_context>
chip_gen: v5e
topology: v5e:2x2
jax: 0.10.0
libtpu: 0.0.40
codegen_flags: <defaults>
</compile_context>

<pallas_src>
import functools
import math

import jax
import jax.numpy as jnp
from jax import lax
from jax.experimental import pallas as pl
from jax.experimental.pallas import tpu as pltpu


def _round_up(a, b):
    return (a + b - 1) // b * b


def _cconv_kernel(sel_ref, x_ref, wb_ref, e_ref, r_ref, b_ref, out_ref, *,
                  dot_precision, prod_dtype):
    """One N-tile of the CConvFixed forward.

    sel_ref : (tn, M*S)        lane index = m*S + s          (bf16 or f32)
    x_ref   : (tn, M*Ci)       lane index = m*Ci + c         (bf16 or f32)
    wb_ref  : (M*S, M*Ci*Co)   block-diag expanded weight    (bf16 or f32)
    e_ref   : (M*Ci, M*Ci*Co)  0/1 lane-expansion matrix     (bf16 or f32)
    r_ref   : (M*Ci*Co, Co)    0/1 group-sum matrix          (bf16 or f32)
    b_ref   : (1, Co)          bias                          (f32)
    out_ref : (tn, Co)                                       (f32)
    """
    sel = sel_ref[...]
    x = x_ref[...]

    # H[n, m*Ci*Co + c*Co + o] = sum_s sel[n, m*S+s] * w[s, c, o]     (K = M*S)
    h = jnp.dot(sel, wb_ref[...], precision=dot_precision,
                preferred_element_type=jnp.float32)
    # Xe[n, m*Ci*Co + c*Co + o] = x[n, m*Ci + c]   (lane expansion done on the MXU)
    xe = jnp.dot(x, e_ref[...], precision=dot_precision,
                 preferred_element_type=jnp.float32)
    # out[n, o] = sum_{m,c} H * Xe                                    (K = M*Ci*Co)
    prod = (h * xe).astype(prod_dtype)
    out = jnp.dot(prod, r_ref[...], precision=dot_precision,
                  preferred_element_type=jnp.float32)
    out_ref[...] = out + b_ref[...]


def cconv_fixed_forward(select_mat, patch_fixed, weight, bias, *,
                        tn=2048, precision="bf16"):
    """CConvFixed forward.

    select_mat : (N, M, 1, S);  patch_fixed : (N, M, Ci, 1)
    weight     : (1, 1, S, Co*Ci);  bias : (1, Co, 1).  Returns (N, Co, 1) f32.

    tn        : rows per grid step (sweep knob; 1024-4096 recommended for large N).
                Automatically capped so large-N runs keep >= 4 grid steps (v7x 2-TC).
    precision : "bf16"    — sel/x/weights shipped & multiplied in native bf16, f32
                            accumulation.  Exact for 0/1 SelectMat lanes; the weight
                            and patch values are rounded to bf16 (fast path).
                "float32" — full f32 streams, dots with lax.Precision.HIGHEST.
    """
    N, M, _, S = select_mat.shape
    Ci = patch_fixed.shape[2]
    Co = bias.shape[1]

    if precision == "bf16":
        stream_dtype = jnp.bfloat16
        const_dtype = jnp.bfloat16
        prod_dtype = jnp.bfloat16
        dot_precision = None                      # native bf16 MXU, f32 accumulate
    elif precision in ("float32", "f32"):
        stream_dtype = jnp.float32
        const_dtype = jnp.float32
        prod_dtype = jnp.float32
        dot_precision = lax.Precision.HIGHEST     # explicit full-f32 matmuls
    else:
        raise ValueError(f"unknown precision {precision!r}")

    # ---- tile / padding bookkeeping (no hard divisibility assert) ----------
    tn = int(tn)
    tn = max(8, min(_round_up(tn, 8), _round_up(N, 8)))
    # Keep >= 4 grid steps when N is large enough (tiles stay >= 512 rows) so the
    # single "parallel" grid axis shards across both TensorCores on v7x.
    tn = min(tn, max(512, _round_up(pl.cdiv(N, 4), 8)))
    n_pad = _round_up(N, tn)

    # ---- lane-dense operands; all layout prep hoisted out of the kernel ----
    sel2 = select_mat.reshape(N, M * S).astype(stream_dtype)       # (N, M*S)
    x2 = patch_fixed.reshape(N, M * Ci).astype(stream_dtype)       # (N, M*Ci)
    if n_pad != N:
        pad = n_pad - N
        sel2 = jnp.pad(sel2, ((0, pad), (0, 0)))
        x2 = jnp.pad(x2, ((0, pad), (0, 0)))

    # weight[0,0,s, o*Ci + c] -> w[s, c, o]
    w_sco = weight.reshape(S, Co, Ci).transpose(0, 2, 1).astype(jnp.float32)
    # WB[m*S + s, m'*Ci*Co + c*Co + o] = delta(m, m') * w[s, c, o]
    wb = jnp.einsum("mk,sco->mskco", jnp.eye(M, dtype=jnp.float32),
                    w_sco).reshape(M * S, M * Ci * Co).astype(const_dtype)
    # E[k, k'*Co + o] = delta(k, k')  (repeats each x lane Co times; 0/1 -> exact)
    e = jnp.repeat(jnp.eye(M * Ci, dtype=jnp.float32), Co,
                   axis=1).astype(const_dtype)
    # R[k*Co + o', o] = delta(o', o)  (sums the M*Ci groups per output channel)
    r = jnp.tile(jnp.eye(Co, dtype=jnp.float32), (M * Ci, 1)).astype(const_dtype)
    b = bias.reshape(1, Co).astype(jnp.float32)

    grid = (n_pad // tn,)
    mci_co = M * Ci * Co

    itemsize_stream = jnp.dtype(stream_dtype).itemsize
    itemsize_const = jnp.dtype(const_dtype).itemsize
    flops_per_row = (2 * (M * S) * mci_co + 2 * (M * Ci) * mci_co
                     + mci_co + 2 * mci_co * Co + Co)
    bytes_accessed = int(n_pad * M * S * itemsize_stream
                         + n_pad * M * Ci * itemsize_stream
                         + n_pad * Co * 4
                         + (wb.size + e.size + r.size) * itemsize_const
                         + b.size * 4)

    # VMEM budget: at tn=2048 the pipelined buffers + f32 intermediates are ~15 MiB;
    # give headroom, but stay under v7x's 64 MiB physical per-TC.
    vmem_limit = (48 if tn >= 2048 else 32) * 1024 * 1024

    kernel = functools.partial(_cconv_kernel, dot_precision=dot_precision,
                               prod_dtype=prod_dtype)

    out = pl.pallas_call(
        kernel,
        out_shape=jax.ShapeDtypeStruct((n_pad, Co), jnp.float32),
        grid_spec=pltpu.PrefetchScalarGridSpec(
            num_scalar_prefetch=0,
            grid=grid,
            in_specs=[
                pl.BlockSpec((tn, M * S), lambda i: (i, 0)),       # sel (lane-dense)
                pl.BlockSpec((tn, M * Ci), lambda i: (i, 0)),      # x
                pl.BlockSpec((M * S, mci_co), lambda i: (0, 0)),   # WB (resident)
                pl.BlockSpec((M * Ci, mci_co), lambda i: (0, 0)),  # E  (resident)
                pl.BlockSpec((mci_co, Co), lambda i: (0, 0)),      # R  (resident)
                pl.BlockSpec((1, Co), lambda i: (0, 0)),           # bias
            ],
            out_specs=pl.BlockSpec((tn, Co), lambda i: (i, 0)),
        ),
        compiler_params=pltpu.CompilerParams(
            dimension_semantics=("parallel",),
            vmem_limit_bytes=vmem_limit,
        ),
        cost_estimate=pl.CostEstimate(
            flops=int(n_pad * flops_per_row),
            transcendentals=0,
            bytes_accessed=bytes_accessed),
    )(sel2, x2, wb, e, r, b)

    return out[:N].reshape(N, Co, 1)


def _reference(select_mat, patch_fixed, weight, bias):
    """Pure-JAX transcription of the PyTorch forward (f32, highest precision)."""
    N, M, _, S = select_mat.shape
    Ci = patch_fixed.shape[2]
    Co = bias.shape[1]
    hp = lax.Precision.HIGHEST
    pw = jnp.einsum("abij,jk->abik", select_mat, weight[0, 0],
                    precision=hp).reshape(N, M, Co, Ci)
    out = jnp.einsum("abij,abjk->abik", pw, patch_fixed, precision=hp).sum(axis=1)
    return out + bias


if __name__ == "__main__":
    ch_in, ch_out = 4, 8
    spatial_size = 16   # config.SpatialSize
    max_size = 8        # config.MaxSize

    key = jax.random.PRNGKey(0)
    k_w, k_b, k_x, k_s, k_x2, k_s3, k_x3 = jax.random.split(key, 7)

    # kaiming_uniform_(weight, a=sqrt(5)): bound = 1/sqrt(fan_in)
    fan_in = 1 * spatial_size * ch_out * ch_in
    w_bound = 1.0 / math.sqrt(fan_in)
    weight = jax.random.uniform(k_w, (1, 1, spatial_size, ch_out * ch_in),
                                minval=-w_bound, maxval=w_bound, dtype=jnp.float32)
    b_bound = 1.0 / math.sqrt(ch_in)
    bias = jax.random.uniform(k_b, (1, ch_out, 1),
                              minval=-b_bound, maxval=b_bound, dtype=jnp.float32)

    # --- test 1: one-hot SelectMat (typical selection matrix), default bf16 path ---
    N1 = 16
    sel_idx = (jnp.arange(N1)[:, None] + jnp.arange(max_size)[None, :]) % spatial_size
    select_mat = jax.nn.one_hot(sel_idx, spatial_size, dtype=jnp.float32)[:, :, None, :]
    patch_fixed = jax.random.normal(k_x, (N1, max_size, ch_in, 1), dtype=jnp.float32)

    out1 = jax.block_until_ready(
        cconv_fixed_forward(select_mat, patch_fixed, weight, bias))
    ref1 = jax.block_until_ready(_reference(select_mat, patch_fixed, weight, bias))
    assert out1.shape == (N1, ch_out, 1), out1.shape
    assert jnp.allclose(out1, ref1, atol=2e-2, rtol=2e-2), \
        f"bf16 path max err {jnp.max(jnp.abs(out1 - ref1))}"

    # --- test 2: arbitrary-valued SelectMat, N not a tile multiple (padding +
    #             multi-step grid), explicit float32/HIGHEST path, tight tolerance ---
    N2 = 20
    select_mat2 = jax.random.uniform(
        k_s, (N2, max_size, 1, spatial_size), dtype=jnp.float32)
    patch_fixed2 = jax.random.normal(k_x2, (N2, max_size, ch_in, 1), dtype=jnp.float32)
    out2 = jax.block_until_ready(
        cconv_fixed_forward(select_mat2, patch_fixed2, weight, bias,
                            tn=8, precision="float32"))
    ref2 = jax.block_until_ready(_reference(select_mat2, patch_fixed2, weight, bias))
    assert out2.shape == (N2, ch_out, 1), out2.shape
    assert jnp.allclose(out2, ref2, atol=1e-4, rtol=1e-4), \
        f"f32 path max err {jnp.max(jnp.abs(out2 - ref2))}"

    # --- test 3: arbitrary-valued SelectMat on the bf16 path, multi-step grid +
    #             padding (tn=16, N=40 -> 3 steps) ---
    N3 = 40
    select_mat3 = jax.random.uniform(
        k_s3, (N3, max_size, 1, spatial_size), dtype=jnp.float32)
    patch_fixed3 = jax.random.normal(k_x3, (N3, max_size, ch_in, 1), dtype=jnp.float32)
    out3 = jax.block_until_ready(
        cconv_fixed_forward(select_mat3, patch_fixed3, weight, bias, tn=16))
    ref3 = jax.block_until_ready(_reference(select_mat3, patch_fixed3, weight, bias))
    assert out3.shape == (N3, ch_out, 1), out3.shape
    assert jnp.allclose(out3, ref3, atol=2e-2, rtol=2e-2), \
        f"bf16 multi-step path max err {jnp.max(jnp.abs(out3 - ref3))}"

    print("KERNEL_OK")
</pallas_src>

<mosaic_0001>
module attributes {stable_mosaic.version = 11 : i64} {
  func.func @_cconv_kernel(%arg0: i32, %arg1: memref<16x128xbf16, #tpu.memory_space<vmem>>, %arg2: memref<16x32xbf16, #tpu.memory_space<vmem>>, %arg3: memref<128x256xbf16, #tpu.memory_space<vmem>>, %arg4: memref<32x256xbf16, #tpu.memory_space<vmem>>, %arg5: memref<256x8xbf16, #tpu.memory_space<vmem>>, %arg6: memref<1x8xf32, #tpu.memory_space<vmem>>, %arg7: memref<16x8xf32, #tpu.memory_space<vmem>>) attributes {dimension_semantics = [#tpu.dimension_semantics<parallel>], iteration_bounds = array<i64: 1>, scalar_prefetch = 0 : i64, scratch_operands = 0 : i64, tpu.core_type = #tpu.core_type<tc>, window_params = [{transform_indices = @transform_0, window_bounds = array<i64: 16, 128>}, {transform_indices = @transform_1, window_bounds = array<i64: 16, 32>}, {pipeline_mode = #tpu.pipeline_mode<synchronous>, transform_indices = @transform_2, window_bounds = array<i64: 128, 256>}, {pipeline_mode = #tpu.pipeline_mode<synchronous>, transform_indices = @transform_3, window_bounds = array<i64: 32, 256>}, {pipeline_mode = #tpu.pipeline_mode<synchronous>, transform_indices = @transform_4, window_bounds = array<i64: 256, 8>}, {pipeline_mode = #tpu.pipeline_mode<synchronous>, transform_indices = @transform_5, window_bounds = array<i64: 1, 8>}, {transform_indices = @transform_6, window_bounds = array<i64: 16, 8>}]} {
    %c0 = arith.constant 0 : index
    %c0_0 = arith.constant 0 : index
    %0 = vector.load %arg1[%c0, %c0_0] : memref<16x128xbf16, #tpu.memory_space<vmem>>, vector<16x128xbf16>
    %c0_1 = arith.constant 0 : index
    %c0_2 = arith.constant 0 : index
    %1 = vector.load %arg2[%c0_1, %c0_2] : memref<16x32xbf16, #tpu.memory_space<vmem>>, vector<16x32xbf16>
    %c0_3 = arith.constant 0 : index
    %c0_4 = arith.constant 0 : index
    %2 = vector.load %arg3[%c0_3, %c0_4] : memref<128x256xbf16, #tpu.memory_space<vmem>>, vector<128x256xbf16>
    %cst = arith.constant dense<0.000000e+00> : vector<16x256xf32>
    %3 = tpu.matmul %0, %2, %cst {dimension_numbers = #tpu.dot_dimension_numbers<[1], [0], [0], [1], [0, 0, 1, 1], [], []>} : vector<16x128xbf16>, vector<128x256xbf16>, vector<16x256xf32> -> vector<16x256xf32>
    %c0_5 = arith.constant 0 : index
    %c0_6 = arith.constant 0 : index
    %4 = vector.load %arg4[%c0_5, %c0_6] : memref<32x256xbf16, #tpu.memory_space<vmem>>, vector<32x256xbf16>
    %cst_7 = arith.constant dense<0.000000e+00> : vector<16x256xf32>
    %5 = tpu.matmul %1, %4, %cst_7 {dimension_numbers = #tpu.dot_dimension_numbers<[1], [0], [0], [1], [0, 0, 1, 1], [], []>} : vector<16x32xbf16>, vector<32x256xbf16>, vector<16x256xf32> -> vector<16x256xf32>
    %6 = arith.mulf %3, %5 : vector<16x256xf32>
    %7 = arith.truncf %6 : vector<16x256xf32> to vector<16x256xbf16>
    %c0_8 = arith.constant 0 : index
    %c0_9 = arith.constant 0 : index
    %8 = vector.load %arg5[%c0_8, %c0_9] : memref<256x8xbf16, #tpu.memory_space<vmem>>, vector<256x8xbf16>
    %cst_10 = arith.constant dense<0.000000e+00> : vector<16x8xf32>
    %9 = tpu.matmul %7, %8, %cst_10 {dimension_numbers = #tpu.dot_dimension_numbers<[1], [0], [0], [1], [0, 0, 1, 1], [], []>} : vector<16x256xbf16>, vector<256x8xbf16>, vector<16x8xf32> -> vector<16x8xf32>
    %c0_11 = arith.constant 0 : index
    %c0_12 = arith.constant 0 : index
    %10 = vector.load %arg6[%c0_11, %c0_12] : memref<1x8xf32, #tpu.memory_space<vmem>>, vector<1x8xf32>
    %11 = vector.broadcast %10 : vector<1x8xf32> to vector<16x8xf32>
    %12 = arith.addf %9, %11 : vector<16x8xf32>
    %c0_13 = arith.constant 0 : index
    %c0_14 = arith.constant 0 : index
    %13 = vector.load %arg7[%c0_13, %c0_14] : memref<16x8xf32, #tpu.memory_space<vmem>>, vector<16x8xf32>
    tpu.vector_store %arg7[%c0_13, %c0_14], %12 {strides = array<i32>} : memref<16x8xf32, #tpu.memory_space<vmem>>, vector<16x8xf32>,
    return
  }
  func.func @transform_0(%arg0: i32) -> (i32, i32) {
    %c0_i32 = arith.constant 0 : i32
    %c0_i32_0 = arith.constant 0 : i32
    return %arg0, %c0_i32 : i32, i32
  }
  func.func @transform_1(%arg0: i32) -> (i32, i32) {
    %c0_i32 = arith.constant 0 : i32
    %c0_i32_0 = arith.constant 0 : i32
    return %arg0, %c0_i32 : i32, i32
  }
  func.func @transform_2(%arg0: i32) -> (i32, i32) {
    %c0_i32 = arith.constant 0 : i32
    %c0_i32_0 = arith.constant 0 : i32
    %c0_i32_1 = arith.constant 0 : i32
    return %c0_i32, %c0_i32_0 : i32, i32
  }
  func.func @transform_3(%arg0: i32) -> (i32, i32) {
    %c0_i32 = arith.constant 0 : i32
    %c0_i32_0 = arith.constant 0 : i32
    %c0_i32_1 = arith.constant 0 : i32
    return %c0_i32, %c0_i32_0 : i32, i32
  }
  func.func @transform_4(%arg0: i32) -> (i32, i32) {
    %c0_i32 = arith.constant 0 : i32
    %c0_i32_0 = arith.constant 0 : i32
    %c0_i32_1 = arith.constant 0 : i32
    return %c0_i32, %c0_i32_0 : i32, i32
  }
  func.func @transform_5(%arg0: i32) -> (i32, i32) {
    %c0_i32 = arith.constant 0 : i32
    %c0_i32_0 = arith.constant 0 : i32
    %c0_i32_1 = arith.constant 0 : i32
    return %c0_i32, %c0_i32_0 : i32, i32
  }
  func.func @transform_6(%arg0: i32) -> (i32, i32) {
    %c0_i32 = arith.constant 0 : i32
    %c0_i32_0 = arith.constant 0 : i32
    return %arg0, %c0_i32 : i32, i32
  }
}

</mosaic_0001>

<bundles_post_ra>
// kernel: tpu_custom_call.1
= control target key start
LH: loop header
LB: loop body
LE: loop exit
PB: predicated region body
PF: predicated region fallthrough
CT: control target
= control target key end

     0   :  { %11 = vsyncpa [#allocation3], 0  ;;  %s882_s0 = inlined_call_operand.vmem [shape: bf16[16,128], index: 0, kind: input, shape index: {}]   ;;  %s883_s1 = inlined_call_operand.hbm [shape: bf16[16,32], index: 1, kind: input, shape index: {}]   ;;  %s884_s2 = inlined_call_operand.vmem [shape: bf16[128,256], index: 2, kind: input, shape index: {}]   ;;  %s885_s3 = inlined_call_operand.hbm [shape: bf16[32,256], index: 3, kind: input, shape index: {}]   ;;  %s886_s4 = inlined_call_operand.vmem [shape: bf16[256,8], index: 4, kind: input, shape index: {}]   ;;  %s887_s5 = inlined_call_operand.vmem [shape: f32[1,8], index: 5, kind: input, shape index: {}]   ;;  %s888_s6 = inlined_call_operand.vmem [shape: f32[16,8], index: 6, kind: output, shape index: {}]  }
   0x1   :  { %s19_s23 = sshll.u32 %s883_s1, 4  ;;  %s20_s23 = int_to_ptr.hbm [resolvable:$true] %s19_s23 }
   0x2   :  { %12 = vsyncpa [#allocation5], 0  ;;  %s677_s24 = smov [#allocation2]   ;;  %s34_s28 = sshll.u32 %s885_s3, 4  ;;  %s35_s28 = int_to_ptr.hbm [resolvable:$true] %s34_s28 }
   0x3   :  { %s21_s25 = sshll.u32 %s677_s24, 4  ;;  %s678_s29 = smov 64   ;;  %s22_s25 = int_to_ptr.vmem [resolvable:$true] %s21_s25 }
   0x4   :  { %s679_s30 = smov 4   ;;  %s680_s7 = smov [#allocation4]  }
   0x5   :  { %27 = dma.hbm_to_vmem [thread:$0]  %s20_s23, 128, %s22_s25, [#allocation3], %s678_s29, %s678_s29, %s679_s30  }
   0x6   :  { %s36_s8 = sshll.u32 %s680_s7, 4  ;;  %s681_s9 = smov 128   ;;  %s37_s8 = int_to_ptr.vmem [resolvable:$true] %s36_s8 }
   0x7   :  { %s682_s10 = smov 8  }
   0x8   :  { %42 = dma.hbm_to_vmem [thread:$0]  %s35_s28, 512, %s37_s8, [#allocation5], %s681_s9, %s681_s9, %s682_s10  }
   0x9   :  { %673 = dma.done.wait [#allocation3], 128  }
   0xa   :  { %674 = vsyncadd [#allocation3], 4294967168 }
   0xb   :  { %675 = dma.done.wait [#allocation5], 512  }
   0xc   :  { %676 = vsyncadd [#allocation5], 4294966784  ;;  %v488_v0 = vld [vmem:[%s884_s2 + $0x70] sm:$0xf]  ;;  %v597_v1 = vld [vmem:[%s884_s2 + $0x74] sm:$0xf0] }
   0xd   :  { %v596_v2 = vld [vmem:[%s884_s2 + $0x74] sm:$0xf]  ;;  %v489_v3 = vor.u32 %v597_v1, %v488_v0  ;;  %v490_v4 = vld [vmem:[%s884_s2 + $0x78] sm:$0xf0]  ;;  %v480_v5 = vld [vmem:[%s884_s2 + $0x60] sm:$0xf] }
   0xe   :  { %v595_v6 = vld [vmem:[%s884_s2 + $0x64] sm:$0xf0]  ;;  %v493_v7 = vor.u32 %v596_v2, %v490_v4  ;;  %v594_v8 = vld [vmem:[%s884_s2 + $0x64] sm:$0xf]  ;;  %v482_v9 = vld [vmem:[%s884_s2 + $0x68] sm:$0xf0] }
   0xf   :  { %162 = vmatpush.bf16.msra.mxu0 %v489_v3  ;;  %v481_v10 = vor.u32 %v595_v6, %v480_v5  ;;  %v472_v11 = vld [vmem:[%s884_s2 + $0x50] sm:$0xf]  ;;  %v485_v12 = vor.u32 %v594_v8, %v482_v9  ;;  %v593_v13 = vld [vmem:[%s884_s2 + $0x54] sm:$0xf0]  ;;  %v601_v15 = vld [vmem:[#allocation4 + $0x14] sm:$0xf0] }
  0x10   :  { %176 = vmatpush.bf16.msra.mxu1 %v493_v7  ;;  %v508_v14 = vld [vmem:[#allocation4 + $0x10] sm:$0xf]  ;;  %v592_v16 = vld [vmem:[%s884_s2 + $0x54] sm:$0xf]  ;;  %v474_v17 = vld [vmem:[%s884_s2 + $0x58] sm:$0xf0]  ;;  %v473_v22 = vor.u32 %v593_v13, %v472_v11 }
  0x11   :  { %v509_v18 = vor.u32 %v601_v15, %v508_v14  ;;  %v600_v19 = vld [vmem:[#allocation4 + $0x14] sm:$0xf]  ;;  %v510_v20 = vld [vmem:[#allocation4 + $0x18] sm:$0xf0]  ;;  %v500_v21 = vld [vmem:[#allocation4] sm:$0xf]  ;;  %v477_v25 = vor.u32 %v592_v16, %v474_v17 }
  0x12   :  { %v513_v23 = vor.u32 %v600_v19, %v510_v20  ;;  %v599_v24 = vld [vmem:[#allocation4 + $0x4] sm:$0xf0]  ;;  %v464_v26 = vld [vmem:[%s884_s2 + $0x40] sm:$0xf]  ;;  %v591_v27 = vld [vmem:[%s884_s2 + $0x44] sm:$0xf0] }
  0x13   :  { %163 = vmatpush.bf16.msra.mxu0 %v481_v10  ;;  %229 = vmatpush.bf16.msra.mxu2 %v509_v18  ;;  %v501_v28 = vor.u32 %v599_v24, %v500_v21  ;;  %v598_v29 = vld [vmem:[#allocation4 + $0x4] sm:$0xf]  ;;  %v590_v30 = vld [vmem:[%s884_s2 + $0x44] sm:$0xf]  ;;  %v502_v32 = vld [vmem:[#allocation4 + $0x8] sm:$0xf0]  ;;  %v465_v35 = vor.u32 %v591_v27, %v464_v26 }
  0x14   :  { %177 = vmatpush.bf16.msra.mxu1 %v485_v12  ;;  %v466_v31 = vld [vmem:[%s884_s2 + $0x48] sm:$0xf0]  ;;  %243 = vmatpush.bf16.msra.mxu3 %v513_v23  ;;  %v505_v33 = vor.u32 %v598_v29, %v502_v32  ;;  %v581_v34 = vld [vmem:[#allocation2] sm:$0xff]  ;;  %vm219_vm0 = vcmask 261120   ;;  %v456_v37 = vld [vmem:[%s884_s2 + $0x30] sm:$0xf] }
  0x15   :  { %v469_v36 = vor.u32 %v590_v30, %v466_v31  ;;  %v589_v38 = vld [vmem:[%s884_s2 + $0x34] sm:$0xf0]  ;;  %v588_v39 = vld [vmem:[%s884_s2 + $0x34] sm:$0xf]  ;;  %v458_v40 = vld [vmem:[%s884_s2 + $0x38] sm:$0xf0] }
  0x16   :  { %v609_v41 = vld [vmem:[%s886_s4 + $0x38] sm:$0xff]  ;;  %v457_v43 = vor.u32 %v589_v38, %v456_v37  ;;  %v448_v44 = vld [vmem:[%s884_s2 + $0x20] sm:$0xf]  ;;  %v461_v45 = vor.u32 %v588_v39, %v458_v40  ;;  %v587_v46 = vld [vmem:[%s884_s2 + $0x24] sm:$0xf0]  ;;  %vm417_vm1 = vcmask 64512  }
  0x17   :  { %164 = vmatpush.bf16.msra.mxu0 %v473_v22  ;;  %230 = vmatpush.bf16.msra.mxu2 %v501_v28  ;;  %v617_v42 = vld [vmem:[%s886_s4 + $0x78] sm:$0xff]  ;;  %v586_v47 = vld [vmem:[%s884_s2 + $0x24] sm:$0xf]  ;;  %v450_v48 = vld [vmem:[%s884_s2 + $0x28] sm:$0xf0]  ;;  %v449_v51 = vor.u32 %v587_v46, %v448_v44 }
  0x18   :  { %178 = vmatpush.bf16.msra.mxu1 %v477_v25  ;;  %244 = vmatpush.bf16.msra.mxu3 %v505_v33  ;;  %v608_v49 = vld [vmem:[%s886_s4 + $0x30] sm:$0xff]  ;;  %v453_v52 = vor.u32 %v586_v47, %v450_v48  ;;  %v585_v54 = vld [vmem:[%s884_s2 + $0x14] sm:$0xf0]  ;;  %v442_v56 = vld [vmem:[%s884_s2 + $0x18] sm:$0xf0] }
  0x19   :  { %v616_v50 = vld [vmem:[%s886_s4 + $0x70] sm:$0xff]  ;;  %v607_v57 = vld [vmem:[%s886_s4 + $0x28] sm:$0xff]  ;;  %v432_v61 = vld [vmem:[%s884_s2] sm:$0xf] }
  0x1a   :  { %514 = vmatmul.msk.bf16.vlgmr.msra.gmra.mxu2 %vm219_vm0, %v581_v34  ;;  %v440_v53 = vld [vmem:[%s884_s2 + $0x10] sm:$0xf]  ;;  %v584_v55 = vld [vmem:[%s884_s2 + $0x14] sm:$0xf]  ;;  %v615_v58 = vld [vmem:[%s886_s4 + $0x68] sm:$0xff] }
  0x1b   :  { %165 = vmatpush.bf16.msra.mxu0 %v465_v35  ;;  %515 = vmatmul.msk.bf16.vlgmr.msra.gmra.mxu3 %vm219_vm0, %v581_v34  ;;  %v441_v59 = vor.u32 %v585_v54, %v440_v53  ;;  %v445_v60 = vor.u32 %v584_v55, %v442_v56  ;;  %v583_v62 = vld [vmem:[%s884_s2 + $0x4] sm:$0xf0]  ;;  %v582_v63 = vld [vmem:[%s884_s2 + $0x4] sm:$0xf]  ;;  %v434_v0 = vld [vmem:[%s884_s2 + $0x8] sm:$0xf0] }
  0x1c   :  { %179 = vmatpush.bf16.msra.mxu1 %v469_v36  ;;  %389 = vmatpush.bf16.msrb.mxu2 %v609_v41  ;;  %v433_v1 = vor.u32 %v583_v62, %v432_v61  ;;  %v437_v2 = vor.u32 %v582_v63, %v434_v0  ;;  %v580_v3 = vld [vmem:[%s882_s0] sm:$0xff]  ;;  %v605_v6 = vld [vmem:[%s886_s4 + $0x18] sm:$0xff]  ;;  %v604_v8 = vld [vmem:[%s886_s4 + $0x10] sm:$0xff] }
  0x1d   :  { %403 = vmatpush.bf16.msrb.mxu3 %v617_v42  ;;  %v606_v4 = vld [vmem:[%s886_s4 + $0x20] sm:$0xff]  ;;  %v613_v7 = vld [vmem:[%s886_s4 + $0x58] sm:$0xff]  ;;  %v612_v9 = vld [vmem:[%s886_s4 + $0x50] sm:$0xff] }
  0x1e   :  { %v614_v5 = vld [vmem:[%s886_s4 + $0x60] sm:$0xff]  ;;  %v603_v10 = vld [vmem:[%s886_s4 + $0x8] sm:$0xff] }
  0x1f   :  { %166 = vmatpush.bf16.msra.mxu0 %v457_v43  ;;  %v611_v11 = vld [vmem:[%s886_s4 + $0x48] sm:$0xff]  ;;  %v602_v12 = vld [vmem:[%s886_s4] sm:$0xff] }
  0x20   :  { %180 = vmatpush.bf16.msra.mxu1 %v461_v45  ;;  %390 = vmatpush.bf16.msrb.mxu2 %v608_v49  ;;  %v610_v13 = vld [vmem:[%s886_s4 + $0x40] sm:$0xff] }
  0x21   :  { %404 = vmatpush.bf16.msrb.mxu3 %v616_v50  ;;  %v624_v28 = vld [vmem:[%s887_s5] ss:$0 sm:$0xff] }
  0x23   :  { %167 = vmatpush.bf16.msra.mxu0 %v449_v51 }
  0x24   :  { %181 = vmatpush.bf16.msra.mxu1 %v453_v52  ;;  %391 = vmatpush.bf16.msrb.mxu2 %v607_v57 }
  0x25   :  { %405 = vmatpush.bf16.msrb.mxu3 %v615_v58 }
  0x27   :  { %168 = vmatpush.bf16.msra.mxu0 %v441_v59 }
  0x28   :  { %182 = vmatpush.bf16.msra.mxu1 %v445_v60  ;;  %392 = vmatpush.bf16.msrb.mxu2 %v606_v4 }
  0x29   :  { %406 = vmatpush.bf16.msrb.mxu3 %v614_v5 }
  0x2b   :  { %169 = vmatpush.bf16.msra.mxu0 %v433_v1 }
  0x2c   :  { %183 = vmatpush.bf16.msra.mxu1 %v437_v2  ;;  %393 = vmatpush.bf16.msrb.mxu2 %v605_v6 }
  0x2d   :  { %407 = vmatpush.bf16.msrb.mxu3 %v613_v7 }
  0x2e   :  { %170 = vmatmul.bf16.vlgmr.msra.gmra.mxu0 %v580_v3 }
  0x2f   :  { %184 = vmatmul.bf16.vlgmr.msra.gmra.mxu1 %v580_v3 }
  0x30   :  { %394 = vmatpush.bf16.msrb.mxu2 %v604_v8 }
  0x31   :  { %408 = vmatpush.bf16.msrb.mxu3 %v612_v9 }
  0x34   :  { %395 = vmatpush.bf16.msrb.mxu2 %v603_v10 }
  0x35   :  { %409 = vmatpush.bf16.msrb.mxu3 %v611_v11 }
  0x38   :  { %396 = vmatpush.bf16.msrb.mxu2 %v602_v12 }
  0x39   :  { %410 = vmatpush.bf16.msrb.mxu3 %v610_v13 }
  0x9d   :  { %v232_v14 = vpop.f32.mrf.mxu2 }
  0x9e   :  { %v246_v15 = vpop.f32.mrf.mxu3 }
  0xa5   :  { %v234_v18 = vpop.f32.mrf.mxu2 }
  0xa6   :  { %v248_v21 = vpop.f32.mrf.mxu3 }
  0xab   :  { %v171_v16 = vpop.f32.mrf.mxu0 }
  0xac   :  { %v185_v17 = vpop.f32.mrf.mxu1  ;;  %v251_v20 = vmul.f32 %v232_v14, %v171_v16 }
  0xad   :  { %v252_v24 = vmul.f32 %v246_v15, %v185_v17 }
  0xb3   :  { %v173_v19 = vpop.f32.mrf.mxu0 }
  0xb4   :  { %v253_v22 = vmul.f32 %v234_v18, %v173_v19  ;;  %v187_v23 = vpop.f32.mrf.mxu1 }
  0xb5   :  { %v254_v25 = vmul.f32 %v248_v21, %v187_v23 }
  0xb6   :  { %v255_v26 = vpack.c.bf16 %v253_v22, %v251_v20 }
  0xb7   :  { %v256_v27 = vpack.c.bf16 %v254_v25, %v252_v24 }
  0xb8   :  { %397 = vmatmul.bf16.vlgmr.msrb.gmra.mxu2 %v255_v26 }
  0xb9   :  { %411 = vmatmul.bf16.vlgmr.msrb.gmra.mxu3 %v256_v27 }
 0x13b   :  { %v398_v29 = vpop.f32.mrf.mxu2 }
 0x13c   :  { %v399_v30 = vadd.f32 %v624_v28, %v398_v29  ;;  %v412_v31 = vpop.f32.mrf.mxu3 }
 0x13e   :  { %v413_v32 = vadd.f32 %v412_v31, %v399_v30 }
 0x140   :  { %418 = vst.msk [vmem:[%s888_s6] sm:$0xff] %vm417_vm1, %v413_v32 }
 0x143   :  { %v400_v33 = vpop.f32.mrf.mxu2 }
 0x144   :  { %v401_v34 = vadd.f32 %v624_v28, %v400_v33  ;;  %v414_v35 = vpop.f32.mrf.mxu3 }
 0x146   :  { %v415_v36 = vadd.f32 %v414_v35, %v401_v34 }
 0x148   :  { %419 = vst.msk [vmem:[%s888_s6 + $0x8] sm:$0xff] %vm417_vm1, %v415_v36 }
 0x149   :  { %424 = vsyncpa [#allocation3], 1 }
 0x14a   :  { %425 = vsyncpa [#allocation5], 1 }

</bundles_post_ra>
